<compile_context>
chip_gen: v6e
topology: v6e:2x2x1
jax: 0.10.0
libtpu: 0.0.40
codegen_flags: <defaults>
</compile_context>

<pallas_src>
import functools

import jax
import jax.numpy as jnp
from jax.experimental import pallas as pl
from jax.experimental.pallas import tpu as pltpu

_LANE = 128                 # lanes per vreg row
_SUB = 8                    # sublanes per vreg tile
_MAX_BLOCK_ROWS = 8192      # (8192, 128) f32 = 4 MiB per input block
_N_CORES = 2                # megacore split; harmless serial sweep on 1-TC chips
_VMEM_LIMIT_BYTES = 40 * 1024 * 1024


def _pow_small_int(x, g):
    """x ** g via a multiply chain for small integer g (avoids EUP exp/log pair)."""
    if g == int(g) and 0 <= int(g) <= 8:
        gi = int(g)
        if gi == 0:
            return jnp.ones_like(x)
        out = x
        for _ in range(gi - 1):
            out = out * x
        return out
    return jnp.power(x, g)


def _focal_elementwise(x, t, gamma):
    """Per-element focal term WITHOUT alpha (alpha folded into the final scalar)."""
    # Numerically stable BCE with logits (== F.binary_cross_entropy_with_logits):
    #   bce = max(x, 0) - x*t + log1p(exp(-|x|))
    bce = jnp.maximum(x, 0.0) - x * t + jnp.log1p(jnp.exp(-jnp.abs(x)))
    pt = jnp.exp(-bce)
    # TODO(synk): for guaranteed-binary targets pt can be derived from exp(-|x|)
    # with one fewer transcendental (EUP win on v7x); not enabled because the
    # reference module also accepts soft targets.
    mod = _pow_small_int(1.0 - pt, gamma)
    return mod * bce


def _focal_loss_kernel(x_ref, t_ref, acc_ref, *, gamma, rows_total,
                       total_blocks, block_rows):
    c = pl.program_id(0)            # core / parallel axis
    i = pl.program_id(1)            # sequential block axis
    inner = pl.num_programs(1)
    blk = c * inner + i             # logical block index (row units -> int32-safe)

    # Zero this core's resident (8,128) partial-sum tile at the start of its sweep.
    @pl.when(i == 0)
    def _():
        acc_ref[...] = jnp.zeros_like(acc_ref)

    # Steps whose (clamped) block duplicates the last real block do nothing.
    @pl.when(blk < total_blocks)
    def _():
        x = x_ref[...].astype(jnp.float32)
        t = t_ref[...].astype(jnp.float32)
        focal = _focal_elementwise(x, t, gamma)

        # Rows of real data in this block (kernel data is always 128-lane-aligned;
        # the sub-row remainder is handled in the wrapper).
        valid_rows = rows_total - blk * block_rows

        @pl.when(valid_rows >= block_rows)
        def _():
            acc_ref[...] += jnp.sum(
                focal.reshape(block_rows // _SUB, _SUB, _LANE), axis=0)

        @pl.when(valid_rows < block_rows)
        def _():
            # Cheap row-granular tail mask: single iota + one compare.
            row = jax.lax.broadcasted_iota(jnp.int32, (block_rows, _LANE), 0)
            masked = jnp.where(row < valid_rows, focal, 0.0)
            acc_ref[...] += jnp.sum(
                masked.reshape(block_rows // _SUB, _SUB, _LANE), axis=0)


def focal_loss(inputs, targets, alpha=0.25, gamma=2.0):
    """Focal loss over arbitrary-shaped logits/targets (mean reduction)."""
    assert inputs.shape == targets.shape
    n = int(inputs.size)

    x_flat = inputs.reshape(-1)
    t_flat = targets.reshape(-1)

    tile = _SUB * _LANE                     # 1024 elements = one f32 vreg
    n_main = (n // tile) * tile             # prefix handled by the kernel
    total = jnp.float32(0.0)

    if n_main > 0:
        if n_main == n:
            x = x_flat.reshape(-1, _LANE)   # pure metadata reshape, no copy
            t = t_flat.reshape(-1, _LANE)
        else:
            x = x_flat[:n_main].reshape(-1, _LANE)
            t = t_flat[:n_main].reshape(-1, _LANE)

        rows = n_main // _LANE              # multiple of 8
        block_rows = min(_MAX_BLOCK_ROWS, rows)
        total_blocks = pl.cdiv(rows, block_rows)
        inner = pl.cdiv(total_blocks, _N_CORES)

        def in_map(c, i):
            # Clamp so steps past the data re-read the last real block (their
            # contribution is skipped in-kernel by the scalar guard).
            return (jnp.minimum(c * inner + i, total_blocks - 1), 0)

        partials = pl.pallas_call(
            functools.partial(
                _focal_loss_kernel, gamma=float(gamma), rows_total=rows,
                total_blocks=total_blocks, block_rows=block_rows),
            out_shape=jax.ShapeDtypeStruct((_N_CORES * _SUB, _LANE), jnp.float32),
            grid_spec=pltpu.PrefetchScalarGridSpec(
                num_scalar_prefetch=0,
                grid=(_N_CORES, inner),
                in_specs=[
                    pl.BlockSpec((block_rows, _LANE), in_map),
                    pl.BlockSpec((block_rows, _LANE), in_map),
                ],
                out_specs=pl.BlockSpec((_SUB, _LANE), lambda c, i: (c, 0)),
            ),
            compiler_params=pltpu.CompilerParams(
                dimension_semantics=("parallel", "arbitrary"),
                vmem_limit_bytes=_VMEM_LIMIT_BYTES),
        )(x, t)
        total = total + jnp.sum(partials)

    if n_main != n:
        # <1024-element misaligned tail: plain JAX on a tiny slice (avoids a
        # full-array pad / copy just to tile-align the input).
        xt = x_flat[n_main:].astype(jnp.float32)
        tt = t_flat[n_main:].astype(jnp.float32)
        total = total + jnp.sum(_focal_elementwise(xt, tt, float(gamma)))

    return total * jnp.float32(alpha) / jnp.float32(n)


def _focal_loss_ref(inputs, targets, alpha=0.25, gamma=2.0):
    x = inputs.astype(jnp.float32)
    t = targets.astype(jnp.float32)
    bce = jnp.maximum(x, 0.0) - x * t + jnp.log1p(jnp.exp(-jnp.abs(x)))
    pt = jnp.exp(-bce)
    return jnp.mean(alpha * (1.0 - pt) ** gamma * bce)


if __name__ == "__main__":
    key = jax.random.PRNGKey(0)
    k1, k2 = jax.random.split(key)

    # Small NCHW-shaped logits / binary targets, as FocalLoss.forward implies.
    shape = (2, 4, 16, 16)
    logits = jax.random.normal(k1, shape, dtype=jnp.float32)
    targets = (jax.random.uniform(k2, shape) > 0.5).astype(jnp.float32)

    loss = focal_loss(logits, targets, alpha=0.25, gamma=2.0)
    loss = jax.block_until_ready(loss)

    ref = _focal_loss_ref(logits, targets, alpha=0.25, gamma=2.0)
    assert jnp.allclose(loss, ref, rtol=1e-5, atol=1e-6), (loss, ref)

    print("KERNEL_OK")
</pallas_src>

<mosaic_0001>
module attributes {stable_mosaic.version = 11 : i64} {
  func.func @_focal_loss_kernel(%arg0: i32, %arg1: i32, %arg2: memref<16x128xf32, #tpu.memory_space<vmem>>, %arg3: memref<16x128xf32, #tpu.memory_space<vmem>>, %arg4: memref<8x128xf32, #tpu.memory_space<vmem>>) attributes {dimension_semantics = [#tpu.dimension_semantics<parallel>, #tpu.dimension_semantics<arbitrary>], iteration_bounds = array<i64: 2, 1>, scalar_prefetch = 0 : i64, scratch_operands = 0 : i64, tpu.core_type = #tpu.core_type<tc>, window_params = [{transform_indices = @transform_0, window_bounds = array<i64: 16, 128>}, {transform_indices = @transform_1, window_bounds = array<i64: 16, 128>}, {transform_indices = @transform_2, window_bounds = array<i64: 8, 128>}]} {
    %c1_i32 = arith.constant 1 : i32
    %0 = arith.muli %arg0, %c1_i32 : i32
    %1 = arith.addi %0, %arg1 : i32
    %c0_i32 = arith.constant 0 : i32
    %2 = arith.cmpi eq, %arg1, %c0_i32 : i32
    %3 = arith.extui %2 : i1 to i32
    %c0_i32_0 = arith.constant 0 : i32
    %4 = arith.cmpi ne, %3, %c0_i32_0 : i32
    scf.if %4 {
      %cst = arith.constant 0.000000e+00 : f32
      %8 = vector.broadcast %cst : f32 to vector<8x128xf32>
      %c0 = arith.constant 0 : index
      %c0_3 = arith.constant 0 : index
      %9 = vector.load %arg4[%c0, %c0_3] : memref<8x128xf32, #tpu.memory_space<vmem>>, vector<8x128xf32>
      tpu.vector_store %arg4[%c0, %c0_3], %8 {strides = array<i32>} : memref<8x128xf32, #tpu.memory_space<vmem>>, vector<8x128xf32>,
    } else {
    }
    %c1_i32_1 = arith.constant 1 : i32
    %5 = arith.cmpi slt, %1, %c1_i32_1 : i32
    %6 = arith.extui %5 : i1 to i32
    %c0_i32_2 = arith.constant 0 : i32
    %7 = arith.cmpi ne, %6, %c0_i32_2 : i32
    scf.if %7 {
      %c0 = arith.constant 0 : index
      %c0_3 = arith.constant 0 : index
      %8 = vector.load %arg2[%c0, %c0_3] : memref<16x128xf32, #tpu.memory_space<vmem>>, vector<16x128xf32>
      %c0_4 = arith.constant 0 : index
      %c0_5 = arith.constant 0 : index
      %9 = vector.load %arg3[%c0_4, %c0_5] : memref<16x128xf32, #tpu.memory_space<vmem>>, vector<16x128xf32>
      %cst = arith.constant 0.000000e+00 : f32
      %10 = vector.broadcast %cst : f32 to vector<16x128xf32>
      %11 = arith.maximumf %8, %10 : vector<16x128xf32>
      %12 = arith.mulf %8, %9 : vector<16x128xf32>
      %13 = arith.subf %11, %12 : vector<16x128xf32>
      %14 = math.absf %8 : vector<16x128xf32>
      %cst_6 = arith.constant 0.000000e+00 : f32
      %15 = vector.broadcast %cst_6 : f32 to vector<16x128xf32>
      %16 = arith.subf %15, %14 : vector<16x128xf32>
      %17 = math.exp %16 : vector<16x128xf32>
      %18 = math.log1p %17 : vector<16x128xf32>
      %19 = arith.addf %13, %18 : vector<16x128xf32>
      %cst_7 = arith.constant 0.000000e+00 : f32
      %20 = vector.broadcast %cst_7 : f32 to vector<16x128xf32>
      %21 = arith.subf %20, %19 : vector<16x128xf32>
      %22 = math.exp %21 : vector<16x128xf32>
      %cst_8 = arith.constant 1.000000e+00 : f32
      %23 = vector.broadcast %cst_8 : f32 to vector<16x128xf32>
      %24 = arith.subf %23, %22 : vector<16x128xf32>
      %25 = arith.mulf %24, %24 : vector<16x128xf32>
      %26 = arith.mulf %25, %19 : vector<16x128xf32>
      %c16_i32 = arith.constant 16 : i32
      %27 = arith.muli %1, %c16_i32 : i32
      %c16_i32_9 = arith.constant 16 : i32
      %28 = arith.subi %c16_i32_9, %27 : i32
      %c16_i32_10 = arith.constant 16 : i32
      %29 = arith.cmpi sge, %28, %c16_i32_10 : i32
      %30 = arith.extui %29 : i1 to i32
      %c0_i32_11 = arith.constant 0 : i32
      %31 = arith.cmpi ne, %30, %c0_i32_11 : i32
      scf.if %31 {
        %c0_14 = arith.constant 0 : index
        %c0_15 = arith.constant 0 : index
        %35 = vector.load %arg4[%c0_14, %c0_15] : memref<8x128xf32, #tpu.memory_space<vmem>>, vector<8x128xf32>
        %36 = vector.shape_cast %26 : vector<16x128xf32> to vector<2x8x128xf32>
        %cst_16 = arith.constant dense<0.000000e+00> : vector<8x128xf32>
        %37 = vector.multi_reduction <add>, %36, %cst_16 [0] : vector<2x8x128xf32> to vector<8x128xf32>
        %38 = arith.addf %35, %37 : vector<8x128xf32>
        %c0_17 = arith.constant 0 : index
        %c0_18 = arith.constant 0 : index
        %39 = vector.load %arg4[%c0_17, %c0_18] : memref<8x128xf32, #tpu.memory_space<vmem>>, vector<8x128xf32>
        tpu.vector_store %arg4[%c0_17, %c0_18], %38 {strides = array<i32>} : memref<8x128xf32, #tpu.memory_space<vmem>>, vector<8x128xf32>,
      } else {
      }
      %c16_i32_12 = arith.constant 16 : i32
      %32 = arith.cmpi slt, %28, %c16_i32_12 : i32
      %33 = arith.extui %32 : i1 to i32
      %c0_i32_13 = arith.constant 0 : i32
      %34 = arith.cmpi ne, %33, %c0_i32_13 : i32
      scf.if %34 {
        %35 = tpu.iota {dimensions = array<i32: 0>} : vector<16x128xi32>
        %36 = vector.broadcast %28 : i32 to vector<16x128xi32>
        %37 = arith.cmpi slt, %35, %36 : vector<16x128xi32>
        %cst_14 = arith.constant 0.000000e+00 : f32
        %38 = vector.broadcast %cst_14 : f32 to vector<16x128xf32>
        %39 = arith.select %37, %26, %38 : vector<16x128xi1>, vector<16x128xf32>
        %c0_15 = arith.constant 0 : index
        %c0_16 = arith.constant 0 : index
        %40 = vector.load %arg4[%c0_15, %c0_16] : memref<8x128xf32, #tpu.memory_space<vmem>>, vector<8x128xf32>
        %41 = vector.shape_cast %39 : vector<16x128xf32> to vector<2x8x128xf32>
        %cst_17 = arith.constant dense<0.000000e+00> : vector<8x128xf32>
        %42 = vector.multi_reduction <add>, %41, %cst_17 [0] : vector<2x8x128xf32> to vector<8x128xf32>
        %43 = arith.addf %40, %42 : vector<8x128xf32>
        %c0_18 = arith.constant 0 : index
        %c0_19 = arith.constant 0 : index
        %44 = vector.load %arg4[%c0_18, %c0_19] : memref<8x128xf32, #tpu.memory_space<vmem>>, vector<8x128xf32>
        tpu.vector_store %arg4[%c0_18, %c0_19], %43 {strides = array<i32>} : memref<8x128xf32, #tpu.memory_space<vmem>>, vector<8x128xf32>,
      } else {
      }
    } else {
    }
    return
  }
  func.func @transform_0(%arg0: i32, %arg1: i32) -> (i32, i32) {
    %c1_i32 = arith.constant 1 : i32
    %0 = arith.muli %arg0, %c1_i32 : i32
    %1 = arith.addi %0, %arg1 : i32
    %c0_i32 = arith.constant 0 : i32
    %2 = arith.minsi %1, %c0_i32 : i32
    %c0_i32_0 = arith.constant 0 : i32
    %c0_i32_1 = arith.constant 0 : i32
    return %2, %c0_i32_0 : i32, i32
  }
  func.func @transform_1(%arg0: i32, %arg1: i32) -> (i32, i32) {
    %c1_i32 = arith.constant 1 : i32
    %0 = arith.muli %arg0, %c1_i32 : i32
    %1 = arith.addi %0, %arg1 : i32
    %c0_i32 = arith.constant 0 : i32
    %2 = arith.minsi %1, %c0_i32 : i32
    %c0_i32_0 = arith.constant 0 : i32
    %c0_i32_1 = arith.constant 0 : i32
    return %2, %c0_i32_0 : i32, i32
  }
  func.func @transform_2(%arg0: i32, %arg1: i32) -> (i32, i32) {
    %c0_i32 = arith.constant 0 : i32
    %c0_i32_0 = arith.constant 0 : i32
    return %arg0, %c0_i32 : i32, i32
  }
}

</mosaic_0001>

<bundles_post_ra>
// kernel: tpu_custom_call.1
= control target key start
LH: loop header
LB: loop body
LE: loop exit
PB: predicated region body
PF: predicated region fallthrough
CT: control target
= control target key end

     0   :  { %7 = vsyncpa [#allocation3], 0  ;;  %s956_s0 = inlined_call_operand.hbm [shape: f32[16,128], index: 0, kind: input, shape index: {}]   ;;  %s957_s1 = inlined_call_operand.hbm [shape: f32[16,128], index: 1, kind: input, shape index: {}]   ;;  %s958_s2 = inlined_call_operand.hbm [shape: f32[16,128], index: 2, kind: output, shape index: {}]  }
   0x1   :  { %9 = vsyncpa [#allocation3 + $0x1], 0 }
   0x2   :  { %10 = vsyncpa [#allocation6], 0 }
   0x3   :  { %12 = vsyncpa [#allocation6 + $0x1], 0 }
   0x4   :  { %13 = vsyncpa [#allocation4], 0 }
   0x5   :  { %15 = vsyncpa [#allocation4 + $0x1], 0  ;;  %s755_s9 = smov 0   ;;  %s757_s10 = smov 0  }
   0x6   :  { %s759_s11 = smov 0   ;;  %s761_s12 = smov 0  }
   0x7   :  { %s763_s13 = smov 0   ;;  %s765_s14 = smov 0  }
   0x8   :  { %s767_s15 = smov 0   ;;  %s769_s16 = smov 0  }
   0x9 LB: > { %s441_s17 = sadd.s32 4294967295, %s732_s16   ;;  %s442_s18 = sadd.s32 4294967294, %s732_s16   ;;  %s732_s16 = sphi %s769_s16, %s21_s16   ;;  %s728_s15 = sphi %s767_s15, %s977_s15   ;;  %s724_s14 = sphi %s765_s14, %s976_s14   ;;  %s720_s13 = sphi %s763_s13, %s946_s13   ;;  %s716_s12 = sphi %s761_s12, %s975_s12   ;;  %s712_s11 = sphi %s759_s11, %s974_s11   ;;  %s708_s10 = sphi %s757_s10, %s973_s10   ;;  %s704_s9 = sphi %s755_s9, %s972_s9  }
   0xa   : > { %s33_s19 = sadd.s32 1, %s728_s15  ;;  %p701_p1 = scmp.ne.s32.totalorder %s720_s13, 0 }
   0xb   : > { %p35_p0 = scmp.ge.s32.totalorder %s33_s19, 2  ;;  %p54_p2 = scmp.eq.s32.totalorder %s732_s16, 0 }
   0xc   : > { %p59_p3 = scmp.ne.s32.totalorder %s720_s13, %s716_s12  ;;  %p60_p5 = scmp.eq.s32.totalorder %s441_s17, 0 }
   0xd   : > { %s979_s19 = smov (%p35_p0, %s33_s19), 0  ;;  %p801_p4 = por %p701_p1, %p54_p2 }
   0xe   : > { %p805_p6 = por %p60_p5, %p59_p3  ;;  %s101_s22 = ssub.s32 %s728_s15, %s979_s19 }
   0xf   : > { %p102_p7 = scmp.eq.s32.totalorder %s101_s22, 0  ;;  %s104_s23 = sadd.s32 1, %s712_s11 }
  0x10   : > { %s962_s21 = scalar_select %p805_p6, 1, 0 }
  0x11   : > { %s813_s24 = scalar_select %p102_p7, %s712_s11, %s104_s23  }
  0x12   : > { %p114_p8 = scmp.ne.s32.totalorder %s712_s11, %s708_s10  ;;  %p115_p9 = scmp.eq.s32.totalorder %s441_s17, 1 }
  0x13   : > { %p120_p10 = scmp.ne.s32.totalorder %s708_s10, %s704_s9  ;;  %p121_p11 = scmp.eq.s32.totalorder %s442_s18, 1 }
  0x14   : > { %p819_p12 = por %p115_p9, %p114_p8  ;;  %p482_p1 = scmp.lt.s32.totalorder %s732_s16, 2 }
  0x15   : > { %p824_p0 = por %p121_p11, %p120_p10  ;;  %s734_s27 = smov [#allocation2]  }
  0x16   : > { %s963_s25 = scalar_select %p819_p12, 1, 0 }
  0x17   : > { %s964_s26 = scalar_select %p824_p0, 1, 0 }
  0x18   : > { %s155_s28 = sshll.u32 %s734_s27, 4  ;;  %p831_p2 = pnand %p482_p1, %p801_p4  ;;  %s156_s28 = int_to_ptr.vmem [resolvable:$true] %s155_s28 }
  0x19   : > { %s571_s4 = scalar_lea.hbm %s956_s0, 256 }
  0x1a   : > { %p572_p3 = scmp.ne.s32.totalorder %s956_s0, %s571_s4  ;;  %p573_p5 = pneg %p831_p2 }
  0x1b   : > { %p578_p8 = scmp.lt.s32.totalorder %s571_s4, %s571_s4 }
  0x1c   : > { %p574_p7 = pnand %p573_p5, %p572_p3 }
  0x1e   : > { %p575_p4 = pneg %p574_p7 }
  0x20   : > { %p580_p9 = pnand %p578_p8, %p575_p4 }
  0x22   : > { %583 = shalt.err (!%p580_p9)
}
  0x23   : > { %s584_s7 = scalar_lea.vmem %s156_s28, 256  ;;  %s591_s8 = scalar_lea.vmem %s156_s28, 512 }
  0x24   : > { %p585_p10 = scmp.ne.s32.totalorder %s156_s28, %s584_s7  ;;  %p592_p13 = scmp.lt.s32.totalorder %s156_s28, %s156_s28 }
  0x25   : > { %p593_p0 = scmp.lt.s32.totalorder %s591_s8, %s584_s7 }
  0x26   : > { %p587_p11 = pnand %p585_p10, %p573_p5 }
  0x27   : > { %p594_p12 = por %p593_p0, %p592_p13 }
  0x28   : > { %p588_p1 = pneg %p587_p11 }
  0x2a   : > { %p595_p6 = pnand %p594_p12, %p588_p1 }
  0x2c   : > { %598 = shalt.err (!%p595_p6)
}
  0x2d   : > { %s735_s12 = smov 128   ;;  %s736_s17 = smov 8  }
  0x2e   : > { %474 = dma.hbm_to_vmem [thread:$0]  (!%p831_p2), %s956_s0, 256, %s156_s28, [#allocation3], %s735_s12, %s735_s12, %s736_s17  }
  0x2f   : > { %p451_p3 = scmp.ge.s32.totalorder %s732_s16, 1  ;;  %p187_p7 = scmp.lt.s32.totalorder %s732_s16, 3 }
  0x30   : > { %s737_s23 = smov [#allocation5]   ;;  %s599_s4 = scalar_lea.hbm %s957_s1, 256 }
  0x31   : > { %p856_p4 = pnand %p451_p3, %p187_p7  ;;  %s179_s27 = sshll.u32 %s737_s23, 4  ;;  %s180_s27 = int_to_ptr.vmem [resolvable:$true] %s179_s27 }
  0x32   : > { %p600_p6 = scmp.ne.s32.totalorder %s957_s1, %s599_s4  ;;  %p606_p0 = scmp.lt.s32.totalorder %s599_s4, %s599_s4 }
  0x33   : > { %s966_s22 = scalar_select %p856_p4, 1, 0 }
  0x34   : > { %p602_p12 = pnand %p600_p6, %p573_p5 }
  0x36   : > { %p603_p13 = pneg %p602_p12 }
  0x38   : > { %p608_p8 = pnand %p606_p0, %p603_p13 }
  0x3a   : > { %611 = shalt.err (!%p608_p8)
}
  0x3b   : > { %s612_s28 = scalar_lea.vmem %s180_s27, 256  ;;  %s619_s7 = scalar_lea.vmem %s180_s27, 512 }
  0x3c   : > { %p613_p9 = scmp.ne.s32.totalorder %s180_s27, %s612_s28  ;;  %p620_p1 = scmp.lt.s32.totalorder %s180_s27, %s180_s27 }
  0x3d   : > { %p621_p3 = scmp.lt.s32.totalorder %s619_s7, %s612_s28 }
  0x3e   : > { %p615_p10 = pnand %p613_p9, %p573_p5 }
  0x3f   : > { %p622_p7 = por %p621_p3, %p620_p1 }
  0x40   : > { %p616_p11 = pneg %p615_p10 }
  0x42   : > { %p623_p4 = pnand %p622_p7, %p616_p11 }
  0x44   : > { %626 = shalt.err (!%p623_p4)
}
  0x45   : > { %477 = dma.hbm_to_vmem [thread:$0]  (!%p831_p2), %s957_s1, 256, %s180_s27, [#allocation6], %s735_s12, %s735_s12, %s736_s17  }
  0x46   : > { %p967_p6 = scmp.ne.s32.totalorder %s966_s22, 0 }
  0x47   : > { %s193_s20 = sand.u32 (!%p967_p6), 1, %s720_s13   ;;  %p968_p5 = scmp.ne.s32.totalorder (!%p967_p6), %s962_s21, 0 }
  0x48   : > { %191 = sbr.rel (%p967_p6) target bundleno = 203 (0xcb), region = 28  ;;  %s452_s23 = sshll.u32 (!%p967_p6), %s193_s20, 4 }
  0x49   : > { %s194_s30 = scalar_lea.sflag (!%p967_p6), [#allocation3], %s193_s20  ;;  %s197_s3 = scalar_lea.vmem (!%p967_p6), [#allocation2], %s452_s23 }
  0x4d   : > { %690 = dma.done.wait (%p968_p5), %s194_s30, 256  }
  0x4e   : > { %692 = vsyncadd (%p968_p5), %s194_s30, 4294967040  ;;  %s203_s29 = scalar_lea.sflag [#allocation6], %s193_s20  ;;  %s884_s4 = scalar_lea.vmem [#allocation5], %s452_s23 }
  0x4f   : > { %694 = dma.done.wait (%p968_p5), %s203_s29, 256  }
  0x50   : > { %696 = vsyncadd (%p968_p5), %s203_s29, 4294967040  ;;  %s229_s12 = sand.u32 1, %s708_s10   ;;  %v738_v0 = vmov 0.0   ;;  %p455_p2 = scmp.ge.s32.totalorder %s724_s14, 1 }
  0x51   : > { %s454_s17 = sshll.u32 %s229_s12, 3  ;;  %s456_s27 = sshll.u32 (!%p455_p2), %s724_s14, 4 }
  0x52   : > { %s893_s22 = scalar_lea.vmem [#allocation7], %s454_s17  ;;  %249 = sbr.rel (%p455_p2) target bundleno = 179 (0xb3), region = 44 }
  0x53   : > { %245 = vst [vmem:[%s893_s22] sm:$0xff] %v738_v0  ;;  %s898_s21 = ssub.s32 (!%p455_p2), 16, %s456_s27 }
  0x54   : > { %p457_p4 = scmp.lt.s32.totalorder (!%p455_p2), %s898_s21, 16 }
  0x57   : > { %v250_v1 = vld [vmem:[%s197_s3] sm:$0xff]  ;;  %v251_v2 = vld [vmem:[%s197_s3 + $0x8] sm:$0xff] }
  0x58   : > { %v260_v3 = vand.u32 2147483647, %v250_v1  ;;  %v261_v4 = vand.u32 2147483647, %v251_v2  ;;  %v252_v15 = vld [vmem:[%s884_s4] sm:$0xff]  ;;  %v253_v16 = vld [vmem:[%s884_s4 + $0x8] sm:$0xff] }
  0x59   : > { %v254_v18 = vmax.f32 %v250_v1, 0.0  ;;  %v256_v19 = vmul.f32 %v252_v15, %v250_v1  ;;  %v255_v22 = vmax.f32 %v251_v2, 0.0  ;;  %v257_v23 = vmul.f32 %v253_v16, %v251_v2 }
  0x5a   : > { %v262_v5 = vsub.f32 0.0, %v260_v3  ;;  %v263_v6 = vsub.f32 0.0, %v261_v4 }
  0x5b   : > { %v258_v27 = vsub.f32 %v254_v18, %v256_v19  ;;  %v259_v30 = vsub.f32 %v255_v22, %v257_v23 }
  0x5c   : > { %v264_v7 = vmul.f32 1.442695, %v262_v5  ;;  %v266_v8 = vmul.f32 1.442695, %v263_v6 }
  0x5e   : > { %559 = vpow2.f32 %v264_v7 }
  0x5f   : > { %561 = vpow2.f32 %v266_v8 }
  0x6b   : > { %v560_v9 = vpop.eup %559 }
  0x6c   : > { %v562_v10 = vpop.eup %561  ;;  %v268_v11 = vadd.f32 1.0, %v560_v9  ;;  %v271_v13 = vmul.f32 -0.5, %v560_v9  ;;  %v274_v20 = vand.u32 2147483647, %v560_v9 }
  0x6d   : > { %v277_v12 = vadd.f32 1.0, %v562_v10  ;;  %v280_v14 = vmul.f32 -0.5, %v562_v10  ;;  %v283_v24 = vand.u32 2147483647, %v562_v10 }
  0x6e   : > { %563 = vlog2.f32 %v268_v11  ;;  %v272_v17 = vadd.f32 1.0, %v271_v13  ;;  %vm275_vm0 = vcmp.lt.f32.partialorder %v274_v20, 0.0004427343 }
  0x6f   : > { %565 = vlog2.f32 %v277_v12  ;;  %v281_v21 = vadd.f32 1.0, %v280_v14  ;;  %vm284_vm1 = vcmp.lt.f32.partialorder %v283_v24, 0.0004427343 }
  0x70   : > { %v273_v25 = vmul.f32 %v560_v9, %v272_v17 }
  0x71   : > { %v282_v28 = vmul.f32 %v562_v10, %v281_v21 }
  0x7b   : > { %v564_v26 = vpop.eup %563 }
  0x7c   : > { %v566_v29 = vpop.eup %565  ;;  %v270_v31 = vmul.f32 0.6931472, %v564_v26 }
  0x7d   : > { %v279_v32 = vmul.f32 0.6931472, %v566_v29 }
  0x7e   : > { %v276_v33 = vsel %vm275_vm0, %v273_v25, %v270_v31 }
  0x7f   : > { %v285_v34 = vsel %vm284_vm1, %v282_v28, %v279_v32  ;;  %v286_v35 = vadd.f32 %v276_v33, %v258_v27 }
  0x80   : > { %v287_v36 = vadd.f32 %v285_v34, %v259_v30 }
  0x81   : > { %v288_v37 = vsub.f32 0.0, %v286_v35 }
  0x82   : > { %v289_v38 = vsub.f32 0.0, %v287_v36 }
  0x83   : > { %v290_v39 = vmul.f32 1.442695, %v288_v37 }
  0x84   : > { %v292_v40 = vmul.f32 1.442695, %v289_v38 }
  0x85   : > { %567 = vpow2.f32 %v290_v39 }
  0x86   : > { %569 = vpow2.f32 %v292_v40 }
  0x92   : > { %v568_v41 = vpop.eup %567 }
  0x93   : > { %v570_v42 = vpop.eup %569  ;;  %v294_v43 = vsub.f32 1.0, %v568_v41 }
  0x94   : > { %v295_v44 = vsub.f32 1.0, %v570_v42  ;;  %305 = sbr.rel (%p457_p4) target bundleno = 159 (0x9f), region = 48 }
  0x95   : > { %v296_v45 = vmul.f32 %v294_v43, %v294_v43 }
  0x96   : > { %v297_v46 = vmul.f32 %v295_v44, %v295_v44 }
  0x97   : > { %v298_v47 = vmul.f32 %v296_v45, %v286_v35 }
  0x98   : > { %v299_v48 = vmul.f32 %v297_v46, %v287_v36 }
  0x99   : > { %v306_v49 = vld [vmem:[%s893_s22] sm:$0xff] }
  0x9a   : > { %v307_v50 = vadd.f32 %v299_v48, %v298_v47 }
  0x9c   : > { %v308_v51 = vadd.f32 %v307_v50, %v306_v49 }
  0x9e   : > { %309 = vst [vmem:[%s893_s22] sm:$0xff] %v308_v51 }
  0x9f PF: > { %p458_p12 = scmp.ge.s32.totalorder %s898_s21, 16 }
  0xa1   : > { %313 = sbr.rel (%p458_p12) target bundleno = 179 (0xb3), region = 52 }
  0xa6   : > { %v314_v52 = vlaneseq  ;;  %v317_v53 = vstv %s898_s21  ;;  %v322_v58 = vld [vmem:[%s893_s22] sm:$0xff] }
  0xa8   : > { %v315_v54 = vshrl.u32 %v314_v52, 7 }
  0xaa   : > { %v316_v55 = vadd.s32 8, %v315_v54  ;;  %vm318_vm2 = vcmp.lt.s32.totalorder %v315_v54, %v317_v53 }
  0xab   : > { %v320_v56 = vsel %vm318_vm2, %v298_v47, 0.0 }
  0xac   : > { %vm319_vm3 = vcmp.lt.s32.totalorder %v316_v55, %v317_v53 }
  0xad   : > { %v321_v57 = vsel %vm319_vm3, %v299_v48, 0.0 }
  0xae   : > { %v323_v59 = vadd.f32 %v321_v57, %v320_v56 }
  0xb0   : > { %v324_v60 = vadd.f32 %v323_v59, %v322_v58 }
  0xb2   : > { %325 = vst [vmem:[%s893_s22] sm:$0xff] %v324_v60 }
  0xb3 PF: > { %s460_s5 = sshll.u32 %s724_s14, 7  ;;  %s340_s8 = sshll.u32 %s893_s22, 4  ;;  %s341_s8 = int_to_ptr.vmem [resolvable:$true] %s340_s8 }
  0xb4   : > { %s338_s7 = scalar_lea.hbm %s958_s2, %s460_s5  ;;  %s327_s18 = scalar_lea.sflag [#allocation4], %s229_s12 }
  0xb5   : > { %s627_s20 = scalar_lea.vmem %s341_s8, 128  ;;  %p969_p0 = scmp.ne.s32.totalorder %s963_s25, 0 }
  0xb6   : > { %p628_p13 = scmp.ne.s32.totalorder %s341_s8, %s627_s20  ;;  %s739_s23 = smov [#allocation7]  }
  0xb7   : > { %s631_s30 = sshll.u32 %s739_s23, 4  ;;  %s632_s30 = int_to_ptr.vmem [resolvable:$false] %s631_s30 }
  0xb8   : > { %p629_p8 = pnand %p628_p13, %p969_p0  ;;  %s633_s3 = scalar_lea.vmem %s632_s30, 256 }
  0xb9   : > { %p634_p10 = scmp.lt.s32.totalorder %s341_s8, %s632_s30  ;;  %p635_p11 = scmp.lt.s32.totalorder %s633_s3, %s627_s20 }
  0xba   : > { %p630_p9 = pneg %p629_p8 }
  0xbb   : > { %p636_p1 = por %p635_p11, %p634_p10 }
  0xbd   : > { %p637_p3 = pnand %p636_p1, %p630_p9 }
  0xbf   : > { %640 = shalt.err (!%p637_p3)
}
  0xc0   : > { %s641_s14 = scalar_lea.hbm %s338_s7, 128  ;;  %s645_s12 = scalar_lea.hbm %s958_s2, 256 }
  0xc1   : > { %p642_p7 = scmp.ne.s32.totalorder %s338_s7, %s641_s14  ;;  %p646_p2 = scmp.lt.s32.totalorder %s338_s7, %s958_s2 }
  0xc2   : > { %p647_p4 = scmp.lt.s32.totalorder %s645_s12, %s641_s14 }
  0xc3   : > { %p643_p6 = pnand %p642_p7, %p969_p0 }
  0xc4   : > { %p648_p12 = por %p647_p4, %p646_p2 }
  0xc5   : > { %p644_p5 = pneg %p643_p6 }
  0xc7   : > { %p649_p13 = pnand %p648_p12, %p644_p5 }
  0xc9   : > { %652 = shalt.err (!%p649_p13)
}
  0xca   : > { %469 = dma.vmem_to_hbm [thread:$0]  (%p969_p0), %s341_s8, 128, %s338_s7, %s327_s18  }
  0xcb PF: > { %s352_s27 = sand.u32 1, %s704_s9   ;;  %p970_p8 = scmp.ne.s32.totalorder %s964_s26, 0 }
  0xcc   : > { %p971_p9 = scmp.ge.s32.totalorder %s732_s16, 2  ;;  %s353_s21 = scalar_lea.sflag [#allocation4], %s352_s27 }
  0xce   : > { %p479_p10 = pnand %p971_p9, %p970_p8 }
  0xd0   : > { %p480_p11 = pneg %p479_p10 }
  0xd2   : > { %698 = dma.done.wait (%p480_p11), %s353_s21, 128  }
  0xd3   : > { %700 = vsyncadd (%p480_p11), %s353_s21, 4294967168  ;;  %s21_s16 = sadd.s32 1, %s732_s16   ;;  %s972_s9 = smov %s708_s10 }
  0xd4   : > { %p18_p1 = scmp.ge.s32.totalorder %s21_s16, 4   ;;  %s973_s10 = smov %s712_s11 }
  0xd5   : > { %s974_s11 = smov %s813_s24  ;;  %s975_s12 = smov %s720_s13 }
  0xd6   : > { %s946_s13 = smov 0   ;;  %s976_s14 = smov %s728_s15 }
  0xd7   : > { %s977_s15 = smov %s979_s19  ;;  %20 = sbr.rel (!%p18_p1) target bundleno = 9 (0x9), region = 102 }
  0xdc   :  { %358 = vsyncpa [#allocation3], 1 }
  0xdd   :  { %360 = vsyncpa [#allocation3 + $0x1], 1 }
  0xde   :  { %361 = vsyncpa [#allocation6], 1 }
  0xdf   :  { %363 = vsyncpa [#allocation6 + $0x1], 1 }
  0xe0   :  { %364 = vsyncpa [#allocation4], 1 }
  0xe1   :  { %366 = vsyncpa [#allocation4 + $0x1], 1 }

</bundles_post_ra>
